<compile_context>
chip_gen: v7x
topology: tpu7x:2x2x1
jax: 0.10.0
libtpu: 0.0.40
codegen_flags: <defaults>
</compile_context>

<pallas_src>
import jax
import jax.numpy as jnp
import numpy as np
from jax import lax
from jax.experimental import pallas as pl
from jax.experimental.pallas import tpu as pltpu

_NEG_PAD = -1.0e30  # bias for padded logit lanes -> excluded from LSE / argmax


def _round_up(x, m):
    return (x + m - 1) // m * m


def _make_kernel(fusion_n, fusion_strategy):
    def kernel(x_ref, w_ref, b_ref, tgt_ref, logits_ref, nll_ref):
        TB, O_pad = logits_ref.shape

        # --- fusion + nn.Linear (dropout is identity in eval mode) -----------
        # TODO(synk): training-mode dropout (pltpu.prng_*) not emitted; eval semantics.
        if fusion_strategy == "concat":
            # logits[n,o] = sum_f x[f,n,:] @ W[o, f*H:(f+1)*H].T  (per-chunk MXU,
            # f32 accumulate) -- never materializes the [TB, fusion_n*H] concat.
            acc = jnp.dot(x_ref[0], w_ref[0], preferred_element_type=jnp.float32)
            for f in range(1, fusion_n):
                acc = acc + jnp.dot(x_ref[f], w_ref[f],
                                    preferred_element_type=jnp.float32)
        else:
            fused = x_ref[0].astype(jnp.float32)
            for f in range(1, fusion_n):
                xf = x_ref[f].astype(jnp.float32)
                if fusion_strategy == "mean_pool":
                    fused = fused + xf
                else:  # max_pool
                    fused = jnp.maximum(fused, xf)
            if fusion_strategy == "mean_pool":
                fused = fused * (1.0 / fusion_n)
            acc = jnp.dot(fused, w_ref[0], preferred_element_type=jnp.float32)

        logits = acc + b_ref[...]           # pad lanes carry a -1e30 bias
        logits_ref[...] = logits.astype(logits_ref.dtype)

        # --- CrossEntropyLoss: per-row NLL ------------------------------------
        tgt = tgt_ref[...]                                          # [TB, 1] i32
        col = lax.broadcasted_iota(jnp.int32, (TB, O_pad), 1)       # [TB, O_pad]
        onehot = col == tgt                  # targets < out_dim -> never a pad lane
        m = jnp.max(logits, axis=-1, keepdims=True)
        lse = m + jnp.log(jnp.sum(jnp.exp(logits - m), axis=-1, keepdims=True))
        picked = jnp.sum(jnp.where(onehot, logits, 0.0), axis=-1, keepdims=True)
        nll_ref[...] = (lse - picked).astype(nll_ref.dtype)

    return kernel


def fused_bert_mlp_head(pooler_output, targets, linear_weight, linear_bias,
                        fusion_n, fusion_strategy="concat"):
    """pooler_output: [fusion_n * n_samples, H] (bf16 or f32); targets: [n_samples] int;
    linear_weight: [out_dim, fusion_n*H] ('concat') or [out_dim, H] (pool strategies);
    linear_bias: [out_dim]."""
    if fusion_strategy not in ("concat", "mean_pool", "max_pool"):
        raise ValueError("allowed fusion_strategy: concat | mean_pool | max_pool")

    total, H = pooler_output.shape
    n_samples = total // fusion_n
    O = linear_weight.shape[0]
    O_pad = _round_up(O, 128)                   # lane-dense logits slab
    TB = min(512, _round_up(n_samples, 8))      # batch tile (sublane aligned)
    n_pad = _round_up(n_samples, TB)
    grid = (n_pad // TB,)

    # --- glue: reshape / pad operands (layout only, no compute hoisted) -------
    x = pooler_output.reshape(fusion_n, n_samples, H)
    if n_pad != n_samples:
        x = jnp.pad(x, ((0, 0), (0, n_pad - n_samples), (0, 0)))
    if fusion_strategy == "concat":
        # W[o, f*H + h] -> w_t[f, h, o]
        w_t = jnp.transpose(linear_weight.reshape(O, fusion_n, H), (1, 2, 0))
    else:
        w_t = jnp.transpose(linear_weight, (1, 0))[None]            # [1, H, O]
    w_t = jnp.pad(w_t, ((0, 0), (0, 0), (0, O_pad - O)))            # [chunks, H, O_pad]
    b_pad = jnp.full((1, O_pad), _NEG_PAD, jnp.float32)
    b_pad = b_pad.at[0, :O].set(linear_bias.astype(jnp.float32))
    tgt = jnp.pad(targets.astype(jnp.int32),
                  (0, n_pad - n_samples)).reshape(n_pad, 1)
    w_chunks = w_t.shape[0]

    # --- VMEM budget: 2x (double buffer) tiled operands + resident weights ----
    in_bytes = x.dtype.itemsize
    x_tile = fusion_n * TB * H * in_bytes
    w_bytes = w_chunks * H * O_pad * w_t.dtype.itemsize
    io_tiles = TB * O_pad * 4 + 2 * TB * 128 * 4       # logits + (nll, targets)
    vmem_limit = int(max(32 << 20,
                         min(112 << 20, 2 * (x_tile + io_tiles) + w_bytes + (1 << 20))))

    cost = pl.CostEstimate(
        flops=2 * w_chunks * n_pad * H * O_pad + 8 * n_pad * O_pad,
        transcendentals=n_pad * (O_pad + 1),
        bytes_accessed=(fusion_n * n_pad * H * in_bytes + w_bytes + O_pad * 4
                        + n_pad * 4 + n_pad * O_pad * 4 + n_pad * 4))

    logits_pad, nll_pad = pl.pallas_call(
        _make_kernel(fusion_n, fusion_strategy),
        out_shape=(
            jax.ShapeDtypeStruct((n_pad, O_pad), jnp.float32),   # lane-dense logits
            jax.ShapeDtypeStruct((n_pad, 1), jnp.float32),       # per-row NLL
        ),
        grid_spec=pltpu.PrefetchScalarGridSpec(
            num_scalar_prefetch=0,
            grid=grid,
            in_specs=[
                pl.BlockSpec((fusion_n, TB, H), lambda i: (0, i, 0)),     # pooler tile
                pl.BlockSpec((w_chunks, H, O_pad), lambda i: (0, 0, 0)),  # weights
                pl.BlockSpec((1, O_pad), lambda i: (0, 0)),               # bias
                pl.BlockSpec((TB, 1), lambda i: (i, 0)),                  # targets
            ],
            out_specs=(
                pl.BlockSpec((TB, O_pad), lambda i: (i, 0)),
                pl.BlockSpec((TB, 1), lambda i: (i, 0)),
            ),
        ),
        compiler_params=pltpu.CompilerParams(
            dimension_semantics=("parallel",),   # batch tiles split across TCs
            vmem_limit_bytes=vmem_limit),
        cost_estimate=cost,
    )(x, w_t, b_pad, tgt)

    logits = logits_pad[:n_samples, :O]
    loss = jnp.mean(nll_pad[:n_samples, 0])      # tiny final mean (keeps axis parallel)
    return {"logits": logits, "loss": loss}


def _reference_np(pooler, targets, weight, bias, fusion_n, strategy):
    """NumPy (float64) reference mirroring the PyTorch forward (eval mode)."""
    pooler = np.asarray(pooler, np.float64)
    weight = np.asarray(weight, np.float64)
    bias = np.asarray(bias, np.float64)
    total, H = pooler.shape
    n = total // fusion_n
    pr = pooler.reshape(fusion_n, n, H)
    if strategy == "concat":
        fused = np.concatenate([pr[f] for f in range(fusion_n)], axis=-1)
    elif strategy == "mean_pool":
        fused = pr.mean(axis=0)
    else:
        fused = pr.max(axis=0)
    logits = fused @ weight.T + bias
    m = logits.max(axis=-1, keepdims=True)
    lse = (m + np.log(np.exp(logits - m).sum(axis=-1, keepdims=True)))[:, 0]
    nll = lse - logits[np.arange(n), np.asarray(targets)]
    return logits, nll.mean()


if __name__ == "__main__":
    FUSION_N, N_SAMPLES, H, OUT_DIM = 2, 2, 128, 4

    key = jax.random.PRNGKey(0)
    k_pool, k_param = jax.random.split(key)

    # Synthetic stand-in for bert_model(...)[1] (pooler_output); the fusion_n
    # BERT passes are stacked along the batch dimension, as in the module.
    pooler_output = jax.random.normal(k_pool, (FUSION_N * N_SAMPLES, H), jnp.float32)
    targets = jnp.array([1, 3], dtype=jnp.int32)

    checks = [("concat", FUSION_N * H), ("mean_pool", H), ("max_pool", H)]
    concat_params = None
    for idx, (strategy, in_dim) in enumerate(checks):
        kw, kb = jax.random.split(jax.random.fold_in(k_param, idx))
        bound = 1.0 / np.sqrt(in_dim)
        W = jax.random.uniform(kw, (OUT_DIM, in_dim), jnp.float32, -bound, bound)
        b = jax.random.uniform(kb, (OUT_DIM,), jnp.float32, -bound, bound)

        out = fused_bert_mlp_head(pooler_output, targets, W, b, FUSION_N, strategy)
        jax.block_until_ready(out)

        ref_logits, ref_loss = _reference_np(pooler_output, targets, W, b,
                                             FUSION_N, strategy)
        assert out["logits"].shape == (N_SAMPLES, OUT_DIM), strategy
        assert np.allclose(np.asarray(out["logits"]), ref_logits,
                           atol=1e-2, rtol=1e-2), strategy
        assert abs(float(out["loss"]) - float(ref_loss)) < 1e-2, strategy
        if strategy == "concat":
            concat_params = (W, b)

    # bf16 encoder-output path (halves the HBM read; MXU still accumulates f32).
    W, b = concat_params
    x_bf16 = pooler_output.astype(jnp.bfloat16)
    w_bf16 = W.astype(jnp.bfloat16)
    out_bf16 = fused_bert_mlp_head(x_bf16, targets, w_bf16, b, FUSION_N, "concat")
    jax.block_until_ready(out_bf16)
    ref_logits, ref_loss = _reference_np(x_bf16.astype(jnp.float32), targets,
                                         w_bf16.astype(jnp.float32), b,
                                         FUSION_N, "concat")
    assert np.allclose(np.asarray(out_bf16["logits"]), ref_logits,
                       atol=1e-2, rtol=1e-2)
    assert abs(float(out_bf16["loss"]) - float(ref_loss)) < 1e-2

    print("KERNEL_OK")
</pallas_src>

<mosaic_0001>
module attributes {stable_mosaic.version = 11 : i64} {
  func.func @kernel(%arg0: i32, %arg1: memref<2x8x128xf32, #tpu.memory_space<vmem>>, %arg2: memref<2x128x128xf32, #tpu.memory_space<vmem>>, %arg3: memref<1x128xf32, #tpu.memory_space<vmem>>, %arg4: memref<8x1xi32, #tpu.memory_space<vmem>>, %arg5: memref<8x128xf32, #tpu.memory_space<vmem>>, %arg6: memref<8x1xf32, #tpu.memory_space<vmem>>) attributes {dimension_semantics = [#tpu.dimension_semantics<parallel>], iteration_bounds = array<i64: 1>, scalar_prefetch = 0 : i64, scratch_operands = 0 : i64, tpu.core_type = #tpu.core_type<tc>, window_params = [{transform_indices = @transform_0, window_bounds = array<i64: 2, 8, 128>}, {pipeline_mode = #tpu.pipeline_mode<synchronous>, transform_indices = @transform_1, window_bounds = array<i64: 2, 128, 128>}, {pipeline_mode = #tpu.pipeline_mode<synchronous>, transform_indices = @transform_2, window_bounds = array<i64: 1, 128>}, {transform_indices = @transform_3, window_bounds = array<i64: 8, 1>}, {transform_indices = @transform_4, window_bounds = array<i64: 8, 128>}, {transform_indices = @transform_5, window_bounds = array<i64: 8, 1>}]} {
    %c0 = arith.constant 0 : index
    %c0_0 = arith.constant 0 : index
    %c0_1 = arith.constant 0 : index
    %0 = vector.load %arg1[%c0, %c0_0, %c0_1] : memref<2x8x128xf32, #tpu.memory_space<vmem>>, vector<1x8x128xf32>
    %1 = vector.shape_cast %0 : vector<1x8x128xf32> to vector<8x128xf32>
    %c0_2 = arith.constant 0 : index
    %c0_3 = arith.constant 0 : index
    %c0_4 = arith.constant 0 : index
    %2 = vector.load %arg2[%c0_2, %c0_3, %c0_4] : memref<2x128x128xf32, #tpu.memory_space<vmem>>, vector<1x128x128xf32>
    %3 = vector.shape_cast %2 : vector<1x128x128xf32> to vector<128x128xf32>
    %cst = arith.constant dense<0.000000e+00> : vector<8x128xf32>
    %4 = tpu.matmul %1, %3, %cst {dimension_numbers = #tpu.dot_dimension_numbers<[1], [0], [0], [1], [0, 0, 1, 1], [], []>} : vector<8x128xf32>, vector<128x128xf32>, vector<8x128xf32> -> vector<8x128xf32>
    %c1 = arith.constant 1 : index
    %c0_5 = arith.constant 0 : index
    %c0_6 = arith.constant 0 : index
    %5 = vector.load %arg1[%c1, %c0_5, %c0_6] : memref<2x8x128xf32, #tpu.memory_space<vmem>>, vector<1x8x128xf32>
    %6 = vector.shape_cast %5 : vector<1x8x128xf32> to vector<8x128xf32>
    %c1_7 = arith.constant 1 : index
    %c0_8 = arith.constant 0 : index
    %c0_9 = arith.constant 0 : index
    %7 = vector.load %arg2[%c1_7, %c0_8, %c0_9] : memref<2x128x128xf32, #tpu.memory_space<vmem>>, vector<1x128x128xf32>
    %8 = vector.shape_cast %7 : vector<1x128x128xf32> to vector<128x128xf32>
    %cst_10 = arith.constant dense<0.000000e+00> : vector<8x128xf32>
    %9 = tpu.matmul %6, %8, %cst_10 {dimension_numbers = #tpu.dot_dimension_numbers<[1], [0], [0], [1], [0, 0, 1, 1], [], []>} : vector<8x128xf32>, vector<128x128xf32>, vector<8x128xf32> -> vector<8x128xf32>
    %10 = arith.addf %4, %9 : vector<8x128xf32>
    %c0_11 = arith.constant 0 : index
    %c0_12 = arith.constant 0 : index
    %11 = vector.load %arg3[%c0_11, %c0_12] : memref<1x128xf32, #tpu.memory_space<vmem>>, vector<1x128xf32>
    %12 = vector.broadcast %11 : vector<1x128xf32> to vector<8x128xf32>
    %13 = arith.addf %10, %12 : vector<8x128xf32>
    %c0_13 = arith.constant 0 : index
    %c0_14 = arith.constant 0 : index
    %14 = vector.load %arg5[%c0_13, %c0_14] : memref<8x128xf32, #tpu.memory_space<vmem>>, vector<8x128xf32>
    tpu.vector_store %arg5[%c0_13, %c0_14], %13 {strides = array<i32>} : memref<8x128xf32, #tpu.memory_space<vmem>>, vector<8x128xf32>,
    %c0_15 = arith.constant 0 : index
    %c0_16 = arith.constant 0 : index
    %15 = vector.load %arg4[%c0_15, %c0_16] : memref<8x1xi32, #tpu.memory_space<vmem>>, vector<8x1xi32>
    %16 = tpu.iota {dimensions = array<i32: 1>} : vector<8x128xi32>
    %17 = vector.broadcast %15 : vector<8x1xi32> to vector<8x128xi32>
    %18 = arith.cmpi eq, %16, %17 : vector<8x128xi32>
    %cst_17 = arith.constant dense<0xFF800000> : vector<8xf32>
    %19 = vector.multi_reduction <maximumf>, %13, %cst_17 [1] : vector<8x128xf32> to vector<8xf32>
    %20 = vector.shape_cast %19 : vector<8xf32> to vector<8x1xf32>
    %21 = vector.broadcast %20 : vector<8x1xf32> to vector<8x128xf32>
    %22 = arith.subf %13, %21 : vector<8x128xf32>
    %23 = math.exp %22 : vector<8x128xf32>
    %cst_18 = arith.constant dense<0.000000e+00> : vector<8xf32>
    %24 = vector.multi_reduction <add>, %23, %cst_18 [1] : vector<8x128xf32> to vector<8xf32>
    %25 = vector.shape_cast %24 : vector<8xf32> to vector<8x1xf32>
    %26 = math.log %25 : vector<8x1xf32>
    %27 = arith.addf %20, %26 : vector<8x1xf32>
    %cst_19 = arith.constant 0.000000e+00 : f32
    %28 = vector.broadcast %cst_19 : f32 to vector<8x128xf32>
    %29 = arith.select %18, %13, %28 : vector<8x128xi1>, vector<8x128xf32>
    %cst_20 = arith.constant dense<0.000000e+00> : vector<8xf32>
    %30 = vector.multi_reduction <add>, %29, %cst_20 [1] : vector<8x128xf32> to vector<8xf32>
    %31 = vector.shape_cast %30 : vector<8xf32> to vector<8x1xf32>
    %32 = arith.subf %27, %31 : vector<8x1xf32>
    %c0_21 = arith.constant 0 : index
    %c0_22 = arith.constant 0 : index
    %33 = vector.load %arg6[%c0_21, %c0_22] : memref<8x1xf32, #tpu.memory_space<vmem>>, vector<8x1xf32>
    tpu.vector_store %arg6[%c0_21, %c0_22], %32 {strides = array<i32>} : memref<8x1xf32, #tpu.memory_space<vmem>>, vector<8x1xf32>,
    return
  }
  func.func @transform_0(%arg0: i32) -> (i32, i32, i32) {
    %c0_i32 = arith.constant 0 : i32
    %c0_i32_0 = arith.constant 0 : i32
    %c0_i32_1 = arith.constant 0 : i32
    return %c0_i32, %arg0, %c0_i32_0 : i32, i32, i32
  }
  func.func @transform_1(%arg0: i32) -> (i32, i32, i32) {
    %c0_i32 = arith.constant 0 : i32
    %c0_i32_0 = arith.constant 0 : i32
    %c0_i32_1 = arith.constant 0 : i32
    %c0_i32_2 = arith.constant 0 : i32
    return %c0_i32, %c0_i32_0, %c0_i32_1 : i32, i32, i32
  }
  func.func @transform_2(%arg0: i32) -> (i32, i32) {
    %c0_i32 = arith.constant 0 : i32
    %c0_i32_0 = arith.constant 0 : i32
    %c0_i32_1 = arith.constant 0 : i32
    return %c0_i32, %c0_i32_0 : i32, i32
  }
  func.func @transform_3(%arg0: i32) -> (i32, i32) {
    %c0_i32 = arith.constant 0 : i32
    %c0_i32_0 = arith.constant 0 : i32
    return %arg0, %c0_i32 : i32, i32
  }
  func.func @transform_4(%arg0: i32) -> (i32, i32) {
    %c0_i32 = arith.constant 0 : i32
    %c0_i32_0 = arith.constant 0 : i32
    return %arg0, %c0_i32 : i32, i32
  }
  func.func @transform_5(%arg0: i32) -> (i32, i32) {
    %c0_i32 = arith.constant 0 : i32
    %c0_i32_0 = arith.constant 0 : i32
    return %arg0, %c0_i32 : i32, i32
  }
}

</mosaic_0001>

<bundles_post_ra>
// kernel: tpu_custom_call.1
= control target key start
LH: loop header
LB: loop body
LE: loop exit
PB: predicated region body
PF: predicated region fallthrough
CT: control target
= control target key end

     0   :  { %11 = vsyncpa [#allocation3], 0  ;;  %s615_s0 = inlined_call_operand.hbm [shape: f32[2,8,128], index: 0, kind: input, shape index: {}]   ;;  %s616_s1 = inlined_call_operand.hbm [shape: f32[2,128,128], index: 1, kind: input, shape index: {}]   ;;  %s617_s2 = inlined_call_operand.vmem [shape: f32[1,128], index: 2, kind: input, shape index: {}]   ;;  %s618_s3 = inlined_call_operand.vmem [shape: s32[8,1], index: 3, kind: input, shape index: {}]   ;;  %s619_s4 = inlined_call_operand.hbm [shape: f32[8,128], index: 4, kind: output, shape index: {0}]   ;;  %s620_s5 = inlined_call_operand.vmem [shape: f32[8,1], index: 5, kind: output, shape index: {1}]  }
   0x1   :  { %12 = vsyncpa [#allocation6], 0 }
   0x2   :  { %13 = vsyncpa [#allocation4], 0  ;;  %s515_s18 = smov [#allocation2]   ;;  %s443_s22 = scalar_lea.hbm %s615_s0, 256 }
   0x3   :  { %s19_s19 = sshll.u32 %s515_s18, 4  ;;  %p444_p0 = scmp.ne.s32.totalorder %s615_s0, %s443_s22  ;;  %s20_s19 = int_to_ptr.vmem [resolvable:$true] %s19_s19 }
   0x4   :  { %p447_p1 = scmp.lt.u32.totalorder %s443_s22, %s615_s0 }
   0x6   :  { %p449_p2 = pnand %p447_p1, %p444_p0 }
   0x8   :  { %452 = shalt.err (!%p449_p2)
}
   0x9   :  { %s453_s27 = scalar_lea.vmem %s20_s19, 256  ;;  %p458_p4 = scmp.lt.s32.totalorder %s20_s19, %s20_s19 }
   0xa   :  { %p454_p3 = scmp.ne.s32.totalorder %s20_s19, %s453_s27  ;;  %p459_p5 = scmp.lt.s32.totalorder %s453_s27, %s453_s27 }
   0xc   :  { %p460_p6 = por %p459_p5, %p458_p4 }
   0xe   :  { %p461_p7 = pnand %p460_p6, %p454_p3 }
  0x10   :  { %464 = shalt.err (!%p461_p7)
}
  0x11   :  { %s516_s28 = smov 128   ;;  %s517_s29 = smov 8  }
  0x12   :  { %25 = dma.hbm_to_vmem [thread:$0]  %s615_s0, 256, %s20_s19, [#allocation3], %s516_s28, %s516_s28, %s517_s29  }
  0x13   :  { %s518_s7 = smov [#allocation5]   ;;  %s465_s11 = scalar_lea.hbm %s616_s1, 4096 }
  0x14   :  { %s31_s8 = sshll.u32 %s518_s7, 4  ;;  %p466_p8 = scmp.ne.s32.totalorder %s616_s1, %s465_s11  ;;  %s32_s8 = int_to_ptr.vmem [resolvable:$true] %s31_s8 }
  0x15   :  { %p469_p9 = scmp.lt.u32.totalorder %s465_s11, %s616_s1 }
  0x17   :  { %p471_p10 = pnand %p469_p9, %p466_p8 }
  0x19   :  { %474 = shalt.err (!%p471_p10)
}
  0x1a   :  { %s475_s16 = scalar_lea.vmem %s32_s8, 4096  ;;  %p480_p12 = scmp.lt.s32.totalorder %s32_s8, %s32_s8 }
  0x1b   :  { %p476_p11 = scmp.ne.s32.totalorder %s32_s8, %s475_s16  ;;  %p481_p13 = scmp.lt.s32.totalorder %s475_s16, %s475_s16 }
  0x1d   :  { %p482_p0 = por %p481_p13, %p480_p12 }
  0x1f   :  { %p483_p1 = pnand %p482_p0, %p476_p11 }
  0x21   :  { %486 = shalt.err (!%p483_p1)
}
  0x22   :  { %37 = dma.hbm_to_vmem [thread:$0]  %s616_s1, 4096, %s32_s8, [#allocation6], %s516_s28, %s516_s28, %s517_s29  }
  0x23   :  { %509 = dma.done.wait [#allocation3], 256  }
  0x24   :  { %510 = vsyncadd [#allocation3], 4294967040 }
  0x25   :  { %511 = dma.done.wait [#allocation6], 4096  }
  0x26   :  { %512 = vsyncadd [#allocation6], 4294963200  ;;  %v519_v0 = vmov 0.0|0.0   ;;  %vm520_vm0 = vmmov 0   ;;  %v521_v1 = vmov 0.0   ;;  %v68_v2 = vld [vmem:[#allocation5 + $0x80] sm:$0xff] }
  0x27   :  { %381 = vmatprep.subr.bf16.mxu0 %v519_v0  ;;  %405 = vmatprep.subr.bf16.mxu1 %v519_v0  ;;  %v69_v3 = vld [vmem:[#allocation5 + $0x88] sm:$0xff]  ;;  %v49_v4 = vld [vmem:[#allocation5] sm:$0xff]  ;;  %v70_v7 = vld [vmem:[#allocation5 + $0x90] sm:$0xff]  ;;  %v522_v52 = vmov 0  }
  0x28   :  { %343 = vmatprep.mubr.msk.f32.mxu0 %vm520_vm0, %v521_v1  ;;  %378 = vmatprep.mubr.msk.f32.mxu1 %vm520_vm0, %v521_v1  ;;  %v382_v5 = vpack.c.bf16 %v69_v3, %v68_v2  ;;  %v50_v6 = vld [vmem:[#allocation5 + $0x8] sm:$0xff]  ;;  %v71_v8 = vld [vmem:[#allocation5 + $0x98] sm:$0xff]  ;;  %v51_v10 = vld [vmem:[#allocation5 + $0x10] sm:$0xff] }
  0x29   :  { %v406_v9 = vpack.c.bf16 %v50_v6, %v49_v4  ;;  %v52_v11 = vld [vmem:[#allocation5 + $0x18] sm:$0xff]  ;;  %v385_v12 = vpack.c.bf16 %v71_v8, %v70_v7  ;;  %v72_v14 = vld [vmem:[#allocation5 + $0xa0] sm:$0xff]  ;;  %v73_v15 = vld [vmem:[#allocation5 + $0xa8] sm:$0xff]  ;;  %438 = vset.pattern.permute.xlu0 %v522_v52 }
  0x2a   :  { %383 = vmatpush3.bf16.msra.mxu0 %v382_v5  ;;  %v409_v13 = vpack.c.bf16 %v52_v11, %v51_v10  ;;  %v53_v16 = vld [vmem:[#allocation5 + $0x20] sm:$0xff]  ;;  %v54_v17 = vld [vmem:[#allocation5 + $0x28] sm:$0xff]  ;;  %v388_v18 = vpack.c.bf16 %v73_v15, %v72_v14  ;;  %v74_v20 = vld [vmem:[#allocation5 + $0xb0] sm:$0xff] }
  0x2b   :  { %407 = vmatpush3.bf16.msra.mxu1 %v406_v9  ;;  %384 = vmatprep.subr.bf16.mxu0 %v519_v0  ;;  %v412_v19 = vpack.c.bf16 %v54_v17, %v53_v16  ;;  %v75_v21 = vld [vmem:[#allocation5 + $0xb8] sm:$0xff]  ;;  %v55_v22 = vld [vmem:[#allocation5 + $0x30] sm:$0xff]  ;;  %v76_v26 = vld [vmem:[#allocation5 + $0xc0] sm:$0xff] }
  0x2c   :  { %408 = vmatprep.subr.bf16.mxu1 %v519_v0  ;;  %v56_v23 = vld [vmem:[#allocation5 + $0x38] sm:$0xff]  ;;  %v391_v24 = vpack.c.bf16 %v75_v21, %v74_v20  ;;  %v77_v27 = vld [vmem:[#allocation5 + $0xc8] sm:$0xff]  ;;  %v57_v28 = vld [vmem:[#allocation5 + $0x40] sm:$0xff] }
  0x2d   :  { %v415_v25 = vpack.c.bf16 %v56_v23, %v55_v22  ;;  %v58_v29 = vld [vmem:[#allocation5 + $0x48] sm:$0xff]  ;;  %v394_v30 = vpack.c.bf16 %v77_v27, %v76_v26  ;;  %v78_v32 = vld [vmem:[#allocation5 + $0xd0] sm:$0xff]  ;;  %v79_v33 = vld [vmem:[#allocation5 + $0xd8] sm:$0xff] }
  0x2e   :  { %386 = vmatpush3.bf16.msra.mxu0 %v385_v12  ;;  %v418_v31 = vpack.c.bf16 %v58_v29, %v57_v28  ;;  %v59_v34 = vld [vmem:[#allocation5 + $0x50] sm:$0xff]  ;;  %v60_v35 = vld [vmem:[#allocation5 + $0x58] sm:$0xff]  ;;  %v397_v36 = vpack.c.bf16 %v79_v33, %v78_v32  ;;  %v80_v38 = vld [vmem:[#allocation5 + $0xe0] sm:$0xff] }
  0x2f   :  { %410 = vmatpush3.bf16.msra.mxu1 %v409_v13  ;;  %387 = vmatprep.subr.bf16.mxu0 %v519_v0  ;;  %v421_v37 = vpack.c.bf16 %v60_v35, %v59_v34  ;;  %v81_v39 = vld [vmem:[#allocation5 + $0xe8] sm:$0xff]  ;;  %v61_v40 = vld [vmem:[#allocation5 + $0x60] sm:$0xff]  ;;  %v82_v44 = vld [vmem:[#allocation5 + $0xf0] sm:$0xff] }
  0x30   :  { %411 = vmatprep.subr.bf16.mxu1 %v519_v0  ;;  %v62_v41 = vld [vmem:[#allocation5 + $0x68] sm:$0xff]  ;;  %v400_v42 = vpack.c.bf16 %v81_v39, %v80_v38  ;;  %v83_v45 = vld [vmem:[#allocation5 + $0xf8] sm:$0xff]  ;;  %v63_v46 = vld [vmem:[#allocation5 + $0x70] sm:$0xff] }
  0x31   :  { %v424_v43 = vpack.c.bf16 %v62_v41, %v61_v40  ;;  %v64_v47 = vld [vmem:[#allocation5 + $0x78] sm:$0xff]  ;;  %v403_v48 = vpack.c.bf16 %v83_v45, %v82_v44  ;;  %v48_v51 = vld [vmem:[#allocation2] sm:$0xff] }
  0x32   :  { %389 = vmatpush3.bf16.msra.mxu0 %v388_v18  ;;  %v427_v49 = vpack.c.bf16 %v64_v47, %v63_v46  ;;  %v66_v50 = vld [vmem:[#allocation2 + $0x8] sm:$0xff]  ;;  %v276_v55 = vld [vmem:[%s617_s2] ss:$0 sm:$0xff]  ;;  %s523_s2 = smov [#allocation7]  }
  0x33   :  { %413 = vmatpush3.bf16.msra.mxu1 %v412_v19  ;;  %390 = vmatprep.subr.bf16.mxu0 %v519_v0  ;;  %v233_v60 = vld [vmem:[%s618_s3] sm:$0xff]  ;;  %s262_s21 = sshll.u32 %s523_s2, 4  ;;  %s263_s21 = int_to_ptr.vmem [resolvable:$true] %s262_s21 }
  0x34   :  { %414 = vmatprep.subr.bf16.mxu1 %v519_v0  ;;  %s487_s22 = scalar_lea.vmem %s263_s21, 128  ;;  %p492_p3 = scmp.lt.s32.totalorder %s263_s21, %s263_s21 }
  0x35   :  { %p488_p2 = scmp.ne.s32.totalorder %s263_s21, %s487_s22  ;;  %p493_p4 = scmp.lt.s32.totalorder %s487_s22, %s487_s22 }
  0x36   :  { %392 = vmatpush3.bf16.msra.mxu0 %v391_v24 }
  0x37   :  { %416 = vmatpush3.bf16.msra.mxu1 %v415_v25  ;;  %393 = vmatprep.subr.bf16.mxu0 %v519_v0  ;;  %p494_p5 = por %p493_p4, %p492_p3 }
  0x38   :  { %417 = vmatprep.subr.bf16.mxu1 %v519_v0 }
  0x39   :  { %p495_p6 = pnand %p494_p5, %p488_p2 }
  0x3a   :  { %395 = vmatpush3.bf16.msra.mxu0 %v394_v30 }
  0x3b   :  { %419 = vmatpush3.bf16.msra.mxu1 %v418_v31  ;;  %396 = vmatprep.subr.bf16.mxu0 %v519_v0 }
  0x3c   :  { %420 = vmatprep.subr.bf16.mxu1 %v519_v0 }
  0x3e   :  { %398 = vmatpush3.bf16.msra.mxu0 %v397_v36 }
  0x3f   :  { %422 = vmatpush3.bf16.msra.mxu1 %v421_v37  ;;  %399 = vmatprep.subr.bf16.mxu0 %v519_v0 }
  0x40   :  { %423 = vmatprep.subr.bf16.mxu1 %v519_v0 }
  0x42   :  { %401 = vmatpush3.bf16.msra.mxu0 %v400_v42 }
  0x43   :  { %425 = vmatpush3.bf16.msra.mxu1 %v424_v43  ;;  %402 = vmatprep.subr.bf16.mxu0 %v519_v0 }
  0x44   :  { %426 = vmatprep.subr.bf16.mxu1 %v519_v0  ;;  %v234_v0 = vlaneseq }
  0x46   :  { %404 = vmatpush3.bf16.msra.mxu0 %v403_v48  ;;  %v235_v1 = vand.u32 127, %v234_v0 }
  0x47   :  { %428 = vmatpush3.bf16.msra.mxu1 %v427_v49 }
  0x49   :  { %344 = vmatmul.mubr.f32.vlgmr.msra.gmra.mrb[0].mxu0 %v66_v50 }
  0x4a   :  { %379 = vmatmul.mubr.f32.vlgmr.msra.gmra.mrb[0].mxu1 %v48_v51 }
 0x11c   :  { %v150_v53 = vpop.f32.mrb[0].mxu0 }
 0x11d   :  { %v220_v54 = vpop.f32.mrb[0].mxu1  ;;  %v345_v56 = vpop.f32.mrb[1].mxu0 }
 0x11e   :  { %v221_v57 = vadd.f32 %v220_v54, %v150_v53  ;;  %v380_v58 = vpop.f32.mrb[1].mxu1 }
 0x120   :  { %v231_v59 = vadd.f32 %v276_v55, %v221_v57 }
 0x122   :  { %232 = vst [vmem:[#allocation7] sm:$0xff] %v231_v59  ;;  %240 = vmax.xlane.f32.xlu0 %v231_v59 }
 0x138   :  { %237 = vperm.xlu0 %438, %v233_v60  }
 0x1af   :  { %v241_v61 = vpop.xlane.xlu0 %240 }
 0x1b0   :  { %v242_v62 = vsub.f32 %v231_v59, %v241_v61 }
 0x1b2   :  { %v243_v63 = vmul.f32 1.442695, %v242_v62 }
 0x1b4   :  { %439 = vpow2.f32 %v243_v63 }
 0x1b7   :  { %v238_v2 = vpop.permute.xlu0 %237 }
 0x1b8   :  { %vm239_vm1 = vcmp.eq.s32.totalorder %v235_v1, %v238_v2 }
 0x1b9   :  { %v250_v4 = vsel %vm239_vm1, %v231_v59, 0.0 }
 0x1be   :  { %v440_v3 = vpop.eup %439 }
 0x1bf   :  { %245 = vadd.xlane.f32.xlu1 %v440_v3 }
 0x1c3   :  { %251 = vadd.xlane.f32.xlu1 %v250_v4 }
 0x1c4   :  { %498 = shalt.err (!%p495_p6)
}
 0x1c5   :  { %s499_s24 = scalar_lea.hbm %s619_s4, 128 }
 0x1c6   :  { %p500_p7 = scmp.ne.s32.totalorder %s619_s4, %s499_s24  ;;  %p503_p8 = scmp.lt.u32.totalorder %s499_s24, %s619_s4 }
 0x1c8   :  { %p505_p9 = pnand %p503_p8, %p500_p7 }
 0x1ca   :  { %508 = shalt.err (!%p505_p9)
}
 0x1cb   :  { %265 = dma.vmem_to_hbm [thread:$0]  %s263_s21, 128, %s619_s4, [#allocation4]   ;;  %vm254_vm2 = vcmask 7168  }
 0x24c   :  { %v246_v5 = vpop.xlane.xlu1 %245 }
 0x24d   :  { %441 = vlog2.f32 %v246_v5 }
 0x250   :  { %v252_v9 = vpop.xlane.xlu1 %251 }
 0x257   :  { %v442_v6 = vpop.eup %441 }
 0x258   :  { %v248_v7 = vmul.f32 0.6931472, %v442_v6 }
 0x25a   :  { %v249_v8 = vadd.f32 %v248_v7, %v241_v61 }
 0x25c   :  { %v253_v10 = vsub.f32 %v249_v8, %v252_v9 }
 0x25e   :  { %255 = vst.msk [vmem:[%s620_s5] sm:$0xff] %vm254_vm2, %v253_v10 }
 0x25f   :  { %513 = dma.done.wait [#allocation4], 128  }
 0x260   :  { %514 = vsyncadd [#allocation4], 4294967168 }
 0x261   :  { %273 = vsyncpa [#allocation3], 1 }
 0x262   :  { %274 = vsyncpa [#allocation6], 1 }
 0x263   :  { %275 = vsyncpa [#allocation4], 1 }

</bundles_post_ra>
